<compile_context>
chip_gen: v6e
topology: v6e:2x2x1
jax: 0.10.0
libtpu: 0.0.40
codegen_flags: <defaults>
</compile_context>

<pallas_src>
import functools

import jax
import jax.numpy as jnp
import numpy as np
from jax import lax
from jax.experimental import pallas as pl
from jax.experimental.pallas import tpu as pltpu


def _round_up(x, m):
    return ((x + m - 1) // m) * m


def _matmul_nn_kernel(a_ref, bt_ref, o_ref):
    """o = a @ bT ; a:(tn, Kc)  bT:(Kc, tm)  o:(tn, tm).

    Plain NN contraction: the contracting dim of the B operand sits on the
    sublane axis, so the (Kc, tm) tile only pads Kc up to the next multiple
    of 8 (instead of lane-padding to 128) and Mosaic needs no in-kernel
    transpose (no XLU vxpose).
    """
    o_ref[...] = jnp.dot(
        a_ref[...], bt_ref[...], preferred_element_type=jnp.float32
    ).astype(o_ref.dtype)


def _pick_tile(size, base, cap):
    """Largest cap/2^k tile whose last-tile overshoot stays small."""
    cand = cap
    while cand > base:
        overshoot = _round_up(size, cand) - size
        if overshoot <= max(base, size // 8):
            return cand
        cand //= 2
    return base


def _pick_tiles(n8, m128, kc, vmem_budget=12 * 1024 * 1024):
    """Pick (tn, tm): big lane-dense output tiles, bounded padding overshoot,
    and a double-buffered VMEM footprint that fits the default scoped budget
    on all of v5e (16 MiB) / v6e / v7x (32 MiB)."""
    tn = _pick_tile(n8, 8, 512)
    tm = _pick_tile(m128, 128, 2048)

    def footprint(tn_, tm_):
        kc_lane = _round_up(kc, 128)   # A tile: Kc sits on the lane axis
        kc_sub = _round_up(kc, 8)      # B^T tile: Kc sits on the sublane axis
        # double-buffered f32 tiles: out + A + B^T
        return 2 * 4 * (tn_ * tm_ + tn_ * kc_lane + kc_sub * tm_)

    while footprint(tn, tm) > vmem_budget and tm > 128:
        tm //= 2
    while footprint(tn, tm) > vmem_budget and tn > 8:
        tn //= 2
    return tn, tm


def fused_recon_matmul(A, BT, *, tn, tm, out_dtype=jnp.float32):
    """A:(Npad,Kc), BT:(Kc,Mpad) -> A @ BT as (Npad,Mpad), tiled (tn,tm)."""
    Npad, Kc = A.shape
    Kc2, Mpad = BT.shape
    assert Kc == Kc2 and Npad % tn == 0 and Mpad % tm == 0
    grid = (Npad // tn, Mpad // tm)
    cost = pl.CostEstimate(
        flops=2 * Npad * Mpad * Kc,
        transcendentals=0,
        bytes_accessed=4 * (Npad * Mpad + Npad * Kc + Kc * Mpad),
    )
    return pl.pallas_call(
        _matmul_nn_kernel,
        out_shape=jax.ShapeDtypeStruct((Npad, Mpad), out_dtype),
        grid=grid,
        in_specs=[
            # A tile depends only on the N-tile index (reused across j).
            pl.BlockSpec((tn, Kc), lambda i, j: (i, 0)),
            # B^T tile depends only on the M-tile index; Kc on the sublane axis.
            pl.BlockSpec((Kc, tm), lambda i, j: (0, j)),
        ],
        out_specs=pl.BlockSpec((tn, tm), lambda i, j: (i, j)),
        compiler_params=pltpu.CompilerParams(
            dimension_semantics=("parallel", "parallel"),
        ),
        cost_estimate=cost,
    )(A, BT)


@functools.partial(jax.jit, static_argnames=("m_list", "out_dtype"))
def matrix_list_forward(C1, C2, O1, O2, G1, G2, *, m_list, out_dtype=jnp.float32):
    """Fused forward for all modalities; returns a tuple of (N, M_l) arrays."""
    N, K1 = C1.shape
    K2 = C2.shape[1]
    m_list = tuple(int(m) for m in m_list)

    Kc_raw = K1 + K2 + 1
    Kc = _round_up(Kc_raw, 8)          # zero-pad contraction dim to sublane multiple

    # 128-align each modality's column block so the epilogue slices are
    # lane-aligned reads out of the fused slab.
    m_pad = [_round_up(m, 128) for m in m_list]
    m_off = [0]
    for mp in m_pad[:-1]:
        m_off.append(m_off[-1] + mp)
    M128 = sum(m_pad)
    N8 = _round_up(N, 8)

    tn, tm = _pick_tiles(N8, M128, Kc)
    Npad = _round_up(N8, tn)
    Mpad = _round_up(M128, tm)

    # A = [C1 | C2 | 1 | 0-pad]  (Npad, Kc); padded rows/cols are zero so the
    # extra output rows are zero and dropped below.
    A = jnp.concatenate([C1, C2, jnp.ones((N, 1), jnp.float32)], axis=1)
    A = jnp.pad(A, ((0, Npad - N), (0, Kc - Kc_raw)))

    # B^T built once at its final padded shape (Kc, Mpad):
    #   rows [0, K1)       : G1[l].T
    #   rows [K1, K1+K2)   : O1[l] broadcast along columns
    #   row  K1+K2         : G2[l] @ O2[l]
    # Padded rows/columns stay zero -> zero output columns, dropped below.
    BT = jnp.zeros((Kc, Mpad), jnp.float32)
    for l, M in enumerate(m_list):
        off = int(m_off[l])
        BT = lax.dynamic_update_slice(BT, G1[l].T, (0, off))
        BT = lax.dynamic_update_slice(
            BT, jnp.broadcast_to(O1[l][:, None], (K2, M)), (K1, off))
        BT = lax.dynamic_update_slice(
            BT, (G2[l] @ O2[l])[None, :], (K1 + K2, off))

    out = fused_recon_matmul(A, BT, tn=tn, tm=tm, out_dtype=out_dtype)

    # Per-modality outputs (lane-aligned source offsets).
    # TODO(synk): consumers that can work on the fused (N, M_total) slab should
    # take `out` directly and skip this extra read+write pass over the output.
    outs = []
    for l, M in enumerate(m_list):
        off = int(m_off[l])
        outs.append(out[:N, off:off + M])
    return tuple(outs)


class MatrixListModelComplete:
    """Deterministic JAX re-implementation of the torch module's parameters and
    forward pass (forward runs through the fused Pallas kernel)."""

    def __init__(self, K1, K2, K3, L, N, M_list, seed=0):
        self.L = L
        self.N = N
        self.M_list = tuple(int(m) for m in M_list)
        key = jax.random.PRNGKey(seed)
        ks = jax.random.split(key, 4 + 3 * L)
        std = 0.1
        self.C1 = std * jax.random.normal(ks[0], (N, K1), jnp.float32)
        self.C2 = std * jax.random.normal(ks[1], (N, K2), jnp.float32)
        self.O1 = std * jax.random.normal(ks[2], (L, K2), jnp.float32)
        self.O2 = std * jax.random.normal(ks[3], (L, K3), jnp.float32)
        self.G1 = [std * jax.random.normal(ks[4 + i], (M, K1), jnp.float32)
                   for i, M in enumerate(self.M_list)]
        self.G2 = [std * jax.random.normal(ks[4 + L + i], (M, K3), jnp.float32)
                   for i, M in enumerate(self.M_list)]
        # beta is only used by the negative-binomial loss, kept for parity.
        self.beta = [std * jax.random.normal(ks[4 + 2 * L + i], (1, M), jnp.float32)
                     for i, M in enumerate(self.M_list)]
        # TODO(synk): poisson/gaussian/negative-binomial losses are training-
        # time scalar reductions, not part of forward(); not kernelized here.

    def forward(self):
        return list(matrix_list_forward(
            self.C1, self.C2, self.O1, self.O2,
            tuple(self.G1), tuple(self.G2),
            m_list=self.M_list))

    def forward_reference(self):
        """Pure-jnp reference mirroring the torch semantics."""
        outs = []
        for i in range(self.L):
            t1 = self.C1 @ self.G1[i].T                       # (N, M)
            t2 = self.C2 @ self.O1[i:i + 1].T                 # (N, 1)
            t3 = self.O2[i:i + 1] @ self.G2[i].T              # (1, M)
            outs.append(t1 + t2 + t3)                         # broadcast expand
        return outs


if __name__ == "__main__":
    # Small shapes; deliberately NOT tile-aligned to exercise the padding path.
    K1, K2, K3 = 8, 8, 8
    L = 2
    N = 20                       # not a multiple of 8
    M_list = [100, 256]          # first not a multiple of 128

    model = MatrixListModelComplete(K1, K2, K3, L, N, M_list, seed=0)

    outs = model.forward()
    outs = [jax.block_until_ready(o) for o in outs]

    refs = model.forward_reference()
    for o, r, M in zip(outs, refs, M_list):
        assert o.shape == (N, M), (o.shape, (N, M))
        np.testing.assert_allclose(np.asarray(o), np.asarray(r),
                                   rtol=1e-5, atol=1e-5)

    print("KERNEL_OK")
</pallas_src>

<mosaic_0001>
module attributes {stable_mosaic.version = 11 : i64} {
  func.func @_matmul_nn_kernel(%arg0: i32, %arg1: i32, %arg2: memref<32x24xf32, #tpu.memory_space<vmem>>, %arg3: memref<24x512xf32, #tpu.memory_space<vmem>>, %arg4: memref<32x512xf32, #tpu.memory_space<vmem>>) attributes {dimension_semantics = [#tpu.dimension_semantics<parallel>, #tpu.dimension_semantics<parallel>], iteration_bounds = array<i64: 1, 1>, scalar_prefetch = 0 : i64, scratch_operands = 0 : i64, tpu.core_type = #tpu.core_type<tc>, window_params = [{transform_indices = @transform_0, window_bounds = array<i64: 32, 24>}, {transform_indices = @transform_1, window_bounds = array<i64: 24, 512>}, {transform_indices = @transform_2, window_bounds = array<i64: 32, 512>}]} {
    %c0 = arith.constant 0 : index
    %c0_0 = arith.constant 0 : index
    %0 = vector.load %arg2[%c0, %c0_0] : memref<32x24xf32, #tpu.memory_space<vmem>>, vector<32x24xf32>
    %c0_1 = arith.constant 0 : index
    %c0_2 = arith.constant 0 : index
    %1 = vector.load %arg3[%c0_1, %c0_2] : memref<24x512xf32, #tpu.memory_space<vmem>>, vector<24x512xf32>
    %cst = arith.constant dense<0.000000e+00> : vector<32x512xf32>
    %2 = tpu.matmul %0, %1, %cst {dimension_numbers = #tpu.dot_dimension_numbers<[1], [0], [0], [1], [0, 0, 1, 1], [], []>} : vector<32x24xf32>, vector<24x512xf32>, vector<32x512xf32> -> vector<32x512xf32>
    %c0_3 = arith.constant 0 : index
    %c0_4 = arith.constant 0 : index
    %3 = vector.load %arg4[%c0_3, %c0_4] : memref<32x512xf32, #tpu.memory_space<vmem>>, vector<32x512xf32>
    tpu.vector_store %arg4[%c0_3, %c0_4], %2 {strides = array<i32>} : memref<32x512xf32, #tpu.memory_space<vmem>>, vector<32x512xf32>,
    return
  }
  func.func @transform_0(%arg0: i32, %arg1: i32) -> (i32, i32) {
    %c0_i32 = arith.constant 0 : i32
    %c0_i32_0 = arith.constant 0 : i32
    return %arg0, %c0_i32 : i32, i32
  }
  func.func @transform_1(%arg0: i32, %arg1: i32) -> (i32, i32) {
    %c0_i32 = arith.constant 0 : i32
    %c0_i32_0 = arith.constant 0 : i32
    return %c0_i32, %arg1 : i32, i32
  }
  func.func @transform_2(%arg0: i32, %arg1: i32) -> (i32, i32) {
    %c0_i32 = arith.constant 0 : i32
    return %arg0, %arg1 : i32, i32
  }
}

</mosaic_0001>

<bundles_post_ra>
// kernel: matrix_list_forward.1
= control target key start
LH: loop header
LB: loop body
LE: loop exit
PB: predicated region body
PF: predicated region fallthrough
CT: control target
= control target key end

     0   :  { %v247_v3 = vmov 0.0   ;;  %vm27_vm0 = vcmask 195584   ;;  %s367_s1 = inlined_call_operand.vmem [shape: f32[24,512], index: 1, kind: input, shape index: {}]   ;;  %s368_s0 = inlined_call_operand.vmem [shape: f32[32,24], index: 0, kind: input, shape index: {}]   ;;  %s369_s2 = inlined_call_operand.vmem [shape: f32[32,512], index: 2, kind: output, shape index: {}]  }
   0x1   :  { %v24_v0 = vld [vmem:[%s367_s1 + $0x48] sm:$0xff]  ;;  %v26_v1 = vld [vmem:[%s367_s1 + $0x58] sm:$0xff]  ;;  %v23_v2 = vld [vmem:[%s367_s1 + $0x40] sm:$0xff]  ;;  %104 = vmatprep.mubr.f32.mxu0 %v247_v3  ;;  %193 = vmatprep.mubr.f32.mxu1 %v247_v3 }
   0x2   :  { %66 = vmatprep.subr.mxu0 %v24_v0  ;;  %155 = vmatprep.subr.mxu1 %v26_v1  ;;  %v25_v4 = vld [vmem:[%s367_s1 + $0x50] sm:$0xff]  ;;  %v20_v5 = vld [vmem:[%s367_s1 + $0x28] sm:$0xff]  ;;  %v22_v6 = vld [vmem:[%s367_s1 + $0x38] sm:$0xff] }
   0x3   :  { %67 = vmatpush1.msra.mxu0 %v23_v2  ;;  %156 = vmatpush1.msra.mxu1 %v25_v4  ;;  %v19_v7 = vld [vmem:[%s367_s1 + $0x20] sm:$0xff]  ;;  %v21_v8 = vld [vmem:[%s367_s1 + $0x30] sm:$0xff]  ;;  %v16_v9 = vld [vmem:[%s367_s1 + $0x8] sm:$0xff] }
   0x4   :  { %68 = vmatprep.subr.mxu0 %v20_v5  ;;  %157 = vmatprep.subr.mxu1 %v22_v6  ;;  %v18_v10 = vld [vmem:[%s367_s1 + $0x18] sm:$0xff]  ;;  %v15_v11 = vld [vmem:[%s367_s1] sm:$0xff]  ;;  %v17_v12 = vld [vmem:[%s367_s1 + $0x10] sm:$0xff] }
   0x5   :  { %69 = vmatpush1.msra.mxu0 %v19_v7  ;;  %158 = vmatpush1.msra.mxu1 %v21_v8  ;;  %v11_v13 = vld [vmem:[%s368_s0] sm:$0xff]  ;;  %v12_v14 = vld [vmem:[%s368_s0 + $0x8] sm:$0xff]  ;;  %v13_v15 = vld [vmem:[%s368_s0 + $0x10] sm:$0xff] }
   0x6   :  { %70 = vmatprep.subr.mxu0 %v16_v9  ;;  %159 = vmatprep.subr.mxu1 %v18_v10  ;;  %v14_v16 = vld [vmem:[%s368_s0 + $0x18] sm:$0xff] }
   0x7   :  { %71 = vmatpush1.msra.mxu0 %v15_v11  ;;  %160 = vmatpush1.msra.mxu1 %v17_v12 }
   0x8   :  { %238 = vmatmul.mubr.msk.f32.vlgmr.msra.gmra.mxu0 %vm27_vm0, %v11_v13  ;;  %242 = vmatmul.mubr.msk.f32.vlgmr.msra.gmra.mxu1 %vm27_vm0, %v11_v13 }
   0x9   :  { %110 = vmatprep.mubr.f32.mxu0 %v247_v3  ;;  %199 = vmatprep.mubr.f32.mxu1 %v247_v3 }
   0xc   :  { %239 = vmatmul.mubr.msk.f32.gmra.mxu0 %vm27_vm0, %v12_v14  ;;  %243 = vmatmul.mubr.msk.f32.gmra.mxu1 %vm27_vm0, %v12_v14 }
   0xd   :  { %116 = vmatprep.mubr.f32.mxu0 %v247_v3  ;;  %205 = vmatprep.mubr.f32.mxu1 %v247_v3 }
  0x10   :  { %240 = vmatmul.mubr.msk.f32.gmra.mxu0 %vm27_vm0, %v13_v15  ;;  %244 = vmatmul.mubr.msk.f32.gmra.mxu1 %vm27_vm0, %v13_v15 }
  0x11   :  { %122 = vmatprep.mubr.f32.mxu0 %v247_v3  ;;  %211 = vmatprep.mubr.f32.mxu1 %v247_v3 }
  0x14   :  { %241 = vmatmul.mubr.msk.f32.gmra.mxu0 %vm27_vm0, %v14_v16  ;;  %245 = vmatmul.mubr.msk.f32.gmra.mxu1 %vm27_vm0, %v14_v16 }
  0xc8   :  { %v106_v17 = vpop.f32.mrf.mxu0  ;;  %v195_v18 = vpop.f32.mrf.mxu1 }
  0xc9   :  { %218 = vst [vmem:[%s369_s2] sm:$0xff] %v106_v17  ;;  %220 = vst [vmem:[%s369_s2 + $0x10] sm:$0xff] %v195_v18 }
  0xca   :  { %v108_v19 = vpop.f32.mrf.mxu0  ;;  %v197_v20 = vpop.f32.mrf.mxu1 }
  0xcb   :  { %219 = vst [vmem:[%s369_s2 + $0x8] sm:$0xff] %v108_v19  ;;  %221 = vst [vmem:[%s369_s2 + $0x18] sm:$0xff] %v197_v20 }
  0xcc   :  { %v112_v21 = vpop.f32.mrf.mxu0  ;;  %v201_v22 = vpop.f32.mrf.mxu1 }
  0xcd   :  { %222 = vst [vmem:[%s369_s2 + $0x20] sm:$0xff] %v112_v21  ;;  %224 = vst [vmem:[%s369_s2 + $0x30] sm:$0xff] %v201_v22 }
  0xce   :  { %v114_v23 = vpop.f32.mrf.mxu0  ;;  %v203_v24 = vpop.f32.mrf.mxu1 }
  0xcf   :  { %223 = vst [vmem:[%s369_s2 + $0x28] sm:$0xff] %v114_v23  ;;  %225 = vst [vmem:[%s369_s2 + $0x38] sm:$0xff] %v203_v24 }
  0xd0   :  { %v118_v25 = vpop.f32.mrf.mxu0  ;;  %v207_v26 = vpop.f32.mrf.mxu1 }
  0xd1   :  { %226 = vst [vmem:[%s369_s2 + $0x40] sm:$0xff] %v118_v25  ;;  %228 = vst [vmem:[%s369_s2 + $0x50] sm:$0xff] %v207_v26 }
  0xd2   :  { %v120_v27 = vpop.f32.mrf.mxu0  ;;  %v209_v28 = vpop.f32.mrf.mxu1 }
  0xd3   :  { %227 = vst [vmem:[%s369_s2 + $0x48] sm:$0xff] %v120_v27  ;;  %229 = vst [vmem:[%s369_s2 + $0x58] sm:$0xff] %v209_v28 }
  0xd4   :  { %v124_v29 = vpop.f32.mrf.mxu0  ;;  %v213_v30 = vpop.f32.mrf.mxu1 }
  0xd5   :  { %230 = vst [vmem:[%s369_s2 + $0x60] sm:$0xff] %v124_v29  ;;  %232 = vst [vmem:[%s369_s2 + $0x70] sm:$0xff] %v213_v30 }
  0xd6   :  { %v126_v31 = vpop.f32.mrf.mxu0  ;;  %v215_v32 = vpop.f32.mrf.mxu1 }
  0xd7   :  { %231 = vst [vmem:[%s369_s2 + $0x68] sm:$0xff] %v126_v31  ;;  %233 = vst [vmem:[%s369_s2 + $0x78] sm:$0xff] %v215_v32 }

</bundles_post_ra>
